<compile_context>
chip_gen: v5e
topology: v5e:2x2
jax: 0.10.0
libtpu: 0.0.40
codegen_flags: <defaults>
</compile_context>

<pallas_src>
import functools

import jax
import jax.numpy as jnp
from jax.experimental import pallas as pl
from jax.experimental.pallas import tpu as pltpu

INPUT_DIM = 2
HIDDEN_DIM = 10
OUTPUT_DIM = 1

# Padded (TPU-friendly) sizes.
F_PAD = 8      # input features 2  -> 8   (sublane-friendly, tiny K for the MXU)
H_PAD = 128    # hidden       10  -> 128  (one lane-width, in-VMEM intermediate)
O_PAD = 8      # output        1  -> 8    (narrow lane-masked store, minimal HBM)


def _round_up(n, m):
    return ((n + m - 1) // m) * m


def _mlp_kernel(x_ref, w1_ref, b1_ref, w2_ref, b2_ref, o_ref):
    # x_ref: (TB, F_PAD); weights stay resident in VMEM across all grid steps.
    x = x_ref[...]                                                   # (TB, 8)
    h = jnp.dot(x, w1_ref[...], preferred_element_type=jnp.float32)  # (TB, 128)
    h = jnp.tanh(h + b1_ref[...])
    y = jnp.dot(h, w2_ref[...], preferred_element_type=jnp.float32)  # (TB, 8)
    y = y + b2_ref[...]
    o_ref[...] = jax.nn.sigmoid(y).astype(o_ref.dtype)


def prepare_params(w1, b1, w2, b2):
    """Pad weights/biases ONCE (outside the forward path).

    w1: (INPUT_DIM, HIDDEN_DIM)  -> (F_PAD, H_PAD)
    b1: (HIDDEN_DIM,)            -> (1, H_PAD)
    w2: (HIDDEN_DIM, OUTPUT_DIM) -> (H_PAD, O_PAD)
    b2: (OUTPUT_DIM,)            -> (1, O_PAD)
    Zero padding is mathematically inert (padded hidden cols see tanh(0)=0 and
    multiply zero rows of w2; padded output cols are sliced off).
    """
    w1_p = jnp.zeros((F_PAD, H_PAD), jnp.float32).at[:INPUT_DIM, :HIDDEN_DIM].set(w1)
    b1_p = jnp.zeros((1, H_PAD), jnp.float32).at[0, :HIDDEN_DIM].set(b1)
    w2_p = jnp.zeros((H_PAD, O_PAD), jnp.float32).at[:HIDDEN_DIM, :OUTPUT_DIM].set(w2)
    b2_p = jnp.zeros((1, O_PAD), jnp.float32).at[0, :OUTPUT_DIM].set(b2)
    return w1_p, b1_p, w2_p, b2_p


@jax.jit
def neural_network_forward(x, w1_p, b1_p, w2_p, b2_p):
    """Pallas forward:  sigmoid(linear2(tanh(linear1(x)))).

    x      : (B, INPUT_DIM) float32
    w*_p   : pre-padded params from prepare_params()
    returns: (B, OUTPUT_DIM) float32
    """
    B = x.shape[0]
    # Batch tile: big tiles (1024 rows) for large B to amortize per-step
    # overhead; for small B just one sublane-aligned tile. Per-tile VMEM is
    # ~(TB*8 + TB*8)*4 B * 2 buffers + ~4.5 KiB weights -> well under the
    # scoped VMEM limit on v5e/v6e/v7x.
    TB = 1024 if B >= 1024 else _round_up(max(B, 1), 8)
    Bp = _round_up(B, TB)

    # Only small pad pass: 8-wide features (32 B/row) instead of 128-wide.
    x_p = jnp.zeros((Bp, F_PAD), jnp.float32).at[:B, :INPUT_DIM].set(
        x.astype(jnp.float32))

    out_p = pl.pallas_call(
        _mlp_kernel,
        out_shape=jax.ShapeDtypeStruct((Bp, O_PAD), jnp.float32),
        grid=(Bp // TB,),
        in_specs=[
            pl.BlockSpec((TB, F_PAD), lambda i: (i, 0)),    # x: tiled over batch
            pl.BlockSpec((F_PAD, H_PAD), lambda i: (0, 0)),  # w1: VMEM-resident
            pl.BlockSpec((1, H_PAD), lambda i: (0, 0)),      # b1
            pl.BlockSpec((H_PAD, O_PAD), lambda i: (0, 0)),  # w2
            pl.BlockSpec((1, O_PAD), lambda i: (0, 0)),      # b2
        ],
        out_specs=pl.BlockSpec((TB, O_PAD), lambda i: (i, 0)),
        compiler_params=pltpu.CompilerParams(
            dimension_semantics=("parallel",)),              # megacore on v7x
    )(x_p, w1_p, b1_p, w2_p, b2_p)

    return out_p[:B, :OUTPUT_DIM]


def init_params(key):
    """Deterministic init mirroring the PyTorch module's __init__.

    layer_1: kaiming_uniform_(nonlinearity='relu') -> U(-sqrt(6/fan_in), +)
    layer_2: default nn.Linear init -> U(-1/sqrt(fan_in), +)
    Weights are returned already transposed to (in, out).
    """
    k1, k2, k3, k4 = jax.random.split(key, 4)
    bound1_w = jnp.sqrt(6.0 / INPUT_DIM)
    w1 = jax.random.uniform(k1, (INPUT_DIM, HIDDEN_DIM), jnp.float32,
                            -bound1_w, bound1_w)
    bound1_b = 1.0 / jnp.sqrt(INPUT_DIM)
    b1 = jax.random.uniform(k2, (HIDDEN_DIM,), jnp.float32, -bound1_b, bound1_b)

    bound2 = 1.0 / jnp.sqrt(HIDDEN_DIM)
    w2 = jax.random.uniform(k3, (HIDDEN_DIM, OUTPUT_DIM), jnp.float32,
                            -bound2, bound2)
    b2 = jax.random.uniform(k4, (OUTPUT_DIM,), jnp.float32, -bound2, bound2)
    return w1, b1, w2, b2


if __name__ == "__main__":
    key = jax.random.PRNGKey(0)
    pk, xk = jax.random.split(key)
    w1, b1, w2, b2 = init_params(pk)
    w1_p, b1_p, w2_p, b2_p = prepare_params(w1, b1, w2, b2)

    batch = 8
    x = jax.random.normal(xk, (batch, INPUT_DIM), jnp.float32)

    out = neural_network_forward(x, w1_p, b1_p, w2_p, b2_p)
    out = jax.block_until_ready(out)

    # Reference check in plain JAX (same math, no Pallas).
    ref = jax.nn.sigmoid(jnp.tanh(x @ w1 + b1) @ w2 + b2)
    assert out.shape == (batch, OUTPUT_DIM)
    assert jnp.allclose(out, ref, atol=1e-5, rtol=1e-5)

    print("KERNEL_OK")
</pallas_src>

<mosaic_0001>
module attributes {stable_mosaic.version = 11 : i64} {
  func.func @_mlp_kernel(%arg0: i32, %arg1: memref<8x8xf32, #tpu.memory_space<vmem>>, %arg2: memref<8x128xf32, #tpu.memory_space<vmem>>, %arg3: memref<1x128xf32, #tpu.memory_space<vmem>>, %arg4: memref<128x8xf32, #tpu.memory_space<vmem>>, %arg5: memref<1x8xf32, #tpu.memory_space<vmem>>, %arg6: memref<8x8xf32, #tpu.memory_space<vmem>>) attributes {dimension_semantics = [#tpu.dimension_semantics<parallel>], iteration_bounds = array<i64: 1>, scalar_prefetch = 0 : i64, scratch_operands = 0 : i64, tpu.core_type = #tpu.core_type<tc>, window_params = [{transform_indices = @transform_0, window_bounds = array<i64: 8, 8>}, {pipeline_mode = #tpu.pipeline_mode<synchronous>, transform_indices = @transform_1, window_bounds = array<i64: 8, 128>}, {pipeline_mode = #tpu.pipeline_mode<synchronous>, transform_indices = @transform_2, window_bounds = array<i64: 1, 128>}, {pipeline_mode = #tpu.pipeline_mode<synchronous>, transform_indices = @transform_3, window_bounds = array<i64: 128, 8>}, {pipeline_mode = #tpu.pipeline_mode<synchronous>, transform_indices = @transform_4, window_bounds = array<i64: 1, 8>}, {transform_indices = @transform_5, window_bounds = array<i64: 8, 8>}]} {
    %c0 = arith.constant 0 : index
    %c0_0 = arith.constant 0 : index
    %0 = vector.load %arg1[%c0, %c0_0] : memref<8x8xf32, #tpu.memory_space<vmem>>, vector<8x8xf32>
    %c0_1 = arith.constant 0 : index
    %c0_2 = arith.constant 0 : index
    %1 = vector.load %arg2[%c0_1, %c0_2] : memref<8x128xf32, #tpu.memory_space<vmem>>, vector<8x128xf32>
    %cst = arith.constant dense<0.000000e+00> : vector<8x128xf32>
    %2 = tpu.matmul %0, %1, %cst {dimension_numbers = #tpu.dot_dimension_numbers<[1], [0], [0], [1], [0, 0, 1, 1], [], []>} : vector<8x8xf32>, vector<8x128xf32>, vector<8x128xf32> -> vector<8x128xf32>
    %c0_3 = arith.constant 0 : index
    %c0_4 = arith.constant 0 : index
    %3 = vector.load %arg3[%c0_3, %c0_4] : memref<1x128xf32, #tpu.memory_space<vmem>>, vector<1x128xf32>
    %4 = vector.broadcast %3 : vector<1x128xf32> to vector<8x128xf32>
    %5 = arith.addf %2, %4 : vector<8x128xf32>
    %6 = math.tanh %5 : vector<8x128xf32>
    %c0_5 = arith.constant 0 : index
    %c0_6 = arith.constant 0 : index
    %7 = vector.load %arg4[%c0_5, %c0_6] : memref<128x8xf32, #tpu.memory_space<vmem>>, vector<128x8xf32>
    %cst_7 = arith.constant dense<0.000000e+00> : vector<8x8xf32>
    %8 = tpu.matmul %6, %7, %cst_7 {dimension_numbers = #tpu.dot_dimension_numbers<[1], [0], [0], [1], [0, 0, 1, 1], [], []>} : vector<8x128xf32>, vector<128x8xf32>, vector<8x8xf32> -> vector<8x8xf32>
    %c0_8 = arith.constant 0 : index
    %c0_9 = arith.constant 0 : index
    %9 = vector.load %arg5[%c0_8, %c0_9] : memref<1x8xf32, #tpu.memory_space<vmem>>, vector<1x8xf32>
    %10 = vector.broadcast %9 : vector<1x8xf32> to vector<8x8xf32>
    %11 = arith.addf %8, %10 : vector<8x8xf32>
    %12 = arith.negf %11 : vector<8x8xf32>
    %13 = math.exp %12 : vector<8x8xf32>
    %cst_10 = arith.constant 1.000000e+00 : f32
    %14 = vector.broadcast %cst_10 : f32 to vector<8x8xf32>
    %15 = arith.addf %14, %13 : vector<8x8xf32>
    %16 = arith.divf %14, %15 : vector<8x8xf32>
    %c0_11 = arith.constant 0 : index
    %c0_12 = arith.constant 0 : index
    %17 = vector.load %arg6[%c0_11, %c0_12] : memref<8x8xf32, #tpu.memory_space<vmem>>, vector<8x8xf32>
    tpu.vector_store %arg6[%c0_11, %c0_12], %16 {strides = array<i32>} : memref<8x8xf32, #tpu.memory_space<vmem>>, vector<8x8xf32>,
    return
  }
  func.func @transform_0(%arg0: i32) -> (i32, i32) {
    %c0_i32 = arith.constant 0 : i32
    %c0_i32_0 = arith.constant 0 : i32
    return %arg0, %c0_i32 : i32, i32
  }
  func.func @transform_1(%arg0: i32) -> (i32, i32) {
    %c0_i32 = arith.constant 0 : i32
    %c0_i32_0 = arith.constant 0 : i32
    %c0_i32_1 = arith.constant 0 : i32
    return %c0_i32, %c0_i32_0 : i32, i32
  }
  func.func @transform_2(%arg0: i32) -> (i32, i32) {
    %c0_i32 = arith.constant 0 : i32
    %c0_i32_0 = arith.constant 0 : i32
    %c0_i32_1 = arith.constant 0 : i32
    return %c0_i32, %c0_i32_0 : i32, i32
  }
  func.func @transform_3(%arg0: i32) -> (i32, i32) {
    %c0_i32 = arith.constant 0 : i32
    %c0_i32_0 = arith.constant 0 : i32
    %c0_i32_1 = arith.constant 0 : i32
    return %c0_i32, %c0_i32_0 : i32, i32
  }
  func.func @transform_4(%arg0: i32) -> (i32, i32) {
    %c0_i32 = arith.constant 0 : i32
    %c0_i32_0 = arith.constant 0 : i32
    %c0_i32_1 = arith.constant 0 : i32
    return %c0_i32, %c0_i32_0 : i32, i32
  }
  func.func @transform_5(%arg0: i32) -> (i32, i32) {
    %c0_i32 = arith.constant 0 : i32
    %c0_i32_0 = arith.constant 0 : i32
    return %arg0, %c0_i32 : i32, i32
  }
}

</mosaic_0001>

<bundles_post_ra>
// kernel: neural_network_forward.1
= control target key start
LH: loop header
LB: loop body
LE: loop exit
PB: predicated region body
PF: predicated region fallthrough
CT: control target
= control target key end

     0   :  { %vm26_vm0 = vcmask 64512   ;;  %s220_s1 = inlined_call_operand.vmem [shape: f32[8,128], index: 1, kind: input, shape index: {}]   ;;  %s221_s0 = inlined_call_operand.vmem [shape: f32[8,8], index: 0, kind: input, shape index: {}]   ;;  %s222_s3 = inlined_call_operand.vmem [shape: f32[128,8], index: 3, kind: input, shape index: {}]   ;;  %s223_s2 = inlined_call_operand.vmem [shape: f32[1,128], index: 2, kind: input, shape index: {}]   ;;  %s224_s4 = inlined_call_operand.vmem [shape: f32[1,8], index: 4, kind: input, shape index: {}]   ;;  %s225_s5 = inlined_call_operand.vmem [shape: f32[8,8], index: 5, kind: output, shape index: {}]  }
   0x1   :  { %v21_v0 = vld [vmem:[%s220_s1] sm:$0xff]  ;;  %v66_v2 = vld [vmem:[%s222_s3 + $0x78] sm:$0xff]  ;;  %v65_v3 = vld [vmem:[%s222_s3 + $0x70] sm:$0xff] }
   0x2   :  { %v20_v1 = vld [vmem:[%s221_s0] sm:$0xff]  ;;  %45 = vmatpush.msra.mxu0 %v21_v0  ;;  %71 = vmatpush.msra.mxu1 %v66_v2  ;;  %v64_v4 = vld [vmem:[%s222_s3 + $0x68] sm:$0xff]  ;;  %v62_v6 = vld [vmem:[%s222_s3 + $0x58] sm:$0xff] }
   0x3   :  { %115 = vmatmul.msk.f32.vlgmr.msra.gmra.mxu0 %vm26_vm0, %v20_v1  ;;  %v63_v5 = vld [vmem:[%s222_s3 + $0x60] sm:$0xff]  ;;  %v61_v7 = vld [vmem:[%s222_s3 + $0x50] sm:$0xff]  ;;  %v60_v8 = vld [vmem:[%s222_s3 + $0x48] sm:$0xff] }
   0x4   :  { %72 = vmatpush.msra.mxu1 %v65_v3  ;;  %v59_v9 = vld [vmem:[%s222_s3 + $0x40] sm:$0xff]  ;;  %v58_v10 = vld [vmem:[%s222_s3 + $0x38] sm:$0xff]  ;;  %v57_v11 = vld [vmem:[%s222_s3 + $0x30] sm:$0xff] }
   0x5   :  { %v56_v12 = vld [vmem:[%s222_s3 + $0x28] sm:$0xff]  ;;  %v55_v13 = vld [vmem:[%s222_s3 + $0x20] sm:$0xff]  ;;  %v54_v14 = vld [vmem:[%s222_s3 + $0x18] sm:$0xff] }
   0x6   :  { %73 = vmatpush.msra.mxu1 %v64_v4  ;;  %v53_v15 = vld [vmem:[%s222_s3 + $0x10] sm:$0xff]  ;;  %v52_v16 = vld [vmem:[%s222_s3 + $0x8] sm:$0xff]  ;;  %v51_v17 = vld [vmem:[%s222_s3] sm:$0xff] }
   0x7   :  { %v117_v18 = vld [vmem:[%s223_s2] ss:$0 sm:$0xff] }
   0x8   :  { %74 = vmatpush.msra.mxu1 %v63_v5  ;;  %v118_v22 = vld [vmem:[%s224_s4] ss:$0 sm:$0xff] }
   0xa   :  { %75 = vmatpush.msra.mxu1 %v62_v6 }
   0xc   :  { %76 = vmatpush.msra.mxu1 %v61_v7 }
   0xe   :  { %77 = vmatpush.msra.mxu1 %v60_v8 }
  0x10   :  { %78 = vmatpush.msra.mxu1 %v59_v9 }
  0x12   :  { %79 = vmatpush.msra.mxu1 %v58_v10 }
  0x14   :  { %80 = vmatpush.msra.mxu1 %v57_v11 }
  0x16   :  { %81 = vmatpush.msra.mxu1 %v56_v12 }
  0x18   :  { %82 = vmatpush.msra.mxu1 %v55_v13 }
  0x1a   :  { %83 = vmatpush.msra.mxu1 %v54_v14 }
  0x1c   :  { %84 = vmatpush.msra.mxu1 %v53_v15 }
  0x1e   :  { %85 = vmatpush.msra.mxu1 %v52_v16 }
  0x20   :  { %86 = vmatpush.msra.mxu1 %v51_v17 }
  0x80   :  { %v47_v19 = vpop.f32.mrf.mxu0 }
  0x81   :  { %v48_v20 = vadd.f32 %v117_v18, %v47_v19 }
  0x83   :  { %119 = vtanh.f32 %v48_v20 }
  0x89   :  { %v120_v21 = vpop.eup %119 }
  0x8a   :  { %87 = vmatmul.f32.vlgmr.msra.gmra.mxu1 %v120_v21 }
 0x107   :  { %v88_v23 = vpop.f32.mrf.mxu1 }
 0x108   :  { %v89_v24 = vadd.f32 %v118_v22, %v88_v23 }
 0x10a   :  { %v116_v25 = vmul.f32 -1.442695, %v89_v24 }
 0x10c   :  { %121 = vpow2.f32 %v116_v25 }
 0x112   :  { %v122_v26 = vpop.eup %121 }
 0x113   :  { %v94_v27 = vadd.f32 1.0, %v122_v26 }
 0x115   :  { %123 = vrcp.f32 %v94_v27  ;;  %v106_v31 = vand.u32 2147483648, %v94_v27  ;;  %v104_v33 = vand.u32 2147483647, %v94_v27  ;;  %vm100_vm2 = vweird.f32 %v94_v27 }
 0x117   :  { %v107_v35 = vor.u32 1.1754944e-38, %v106_v31  ;;  %vm105_vm4 = vcmp.eq.f32.partialorder %v104_v33, 8.507059e+37 }
 0x11b   :  { %v124_v28 = vpop.eup %123 }
 0x11c   :  { %v96_v29 = vmul.f32 %v124_v28, %v94_v27  ;;  %vm101_vm1 = vweird.f32 %v124_v28 }
 0x11d   :  { %vm102_vm3 = vmor %vm100_vm2, %vm101_vm1 }
 0x11e   :  { %v97_v30 = vsub.f32 1.0, %v96_v29 }
 0x120   :  { %v98_v32 = vmul.f32 %v124_v28, %v97_v30 }
 0x122   :  { %v99_v34 = vadd.f32 %v124_v28, %v98_v32 }
 0x124   :  { %v103_v36 = vsel %vm102_vm3, %v124_v28, %v99_v34 }
 0x125   :  { %v108_v37 = vsel %vm105_vm4, %v107_v35, %v103_v36 }
 0x126   :  { %110 = vst.msk [vmem:[%s225_s5] sm:$0xff] %vm26_vm0, %v108_v37 }

</bundles_post_ra>
